<compile_context>
chip_gen: v5e
topology: v5e:2x2
jax: 0.10.0
libtpu: 0.0.40
codegen_flags: <defaults>
</compile_context>

<pallas_src>
import numpy as np

import jax
import jax.numpy as jnp
from jax import lax
from jax.experimental import pallas as pl
from jax.experimental.pallas import tpu as pltpu

BN_EPS = 1e-5


# ----------------------------------------------------------------------------
# Fused Pallas kernel: one grid step == B_BLK images, everything stays on-chip.
# ----------------------------------------------------------------------------
def _impala_block_kernel(xe_ref, xo_ref, b1_ref, s1_ref, t1_ref,
                         bres_ref, sres_ref, tres_ref, out_ref):
    f32 = jnp.float32
    bb, hpe, wc = xe_ref.shape            # (B_BLK, hp+2, W*Cin)
    hp = hpe - 2                          # pooled height
    wq = tres_ref.shape[2]                # Wp*Cout
    mdt = b1_ref.dtype                    # MXU input dtype (bf16 or f32)

    xe = xe_ref[...]                      # even input rows  (B, hp+2, W*Cin)
    xo = xo_ref[...]                      # odd  input rows  (B, hp+1, W*Cin)

    # --- conv1 (3x3 VALID) + folded bias/BN, dy taps folded into K -----------
    # Even conv-output rows 2j use input rows (2j, 2j+1, 2j+2); odd rows 2j+1
    # use (2j+1, 2j+2, 2j+3).  Build both im2row slabs with lane concats and
    # flatten the batch into the MXU M dimension.
    lhs_e = jnp.concatenate(
        [xe[:, 0:hp + 1], xo[:, 0:hp + 1], xe[:, 1:hp + 2]], axis=-1)
    lhs_o = jnp.concatenate(
        [xo[:, 0:hp], xe[:, 1:hp + 1], xo[:, 1:hp + 1]], axis=-1)
    b1 = b1_ref[...]
    # The RHS emits the 3 horizontal pool taps as 3 lane chunks of width wq.
    e = jnp.dot(lhs_e.reshape(bb * (hp + 1), 3 * wc), b1,
                preferred_element_type=f32)
    o = jnp.dot(lhs_o.reshape(bb * hp, 3 * wc), b1,
                preferred_element_type=f32)
    e = e * s1_ref[...] + t1_ref[...]
    o = o * s1_ref[...] + t1_ref[...]
    e3 = e.reshape(bb, hp + 1, 3 * wq)
    o3 = o.reshape(bb, hp, 3 * wq)

    # --- maxpool 3x3 stride 2: pure elementwise maxima (VPU only) ------------
    def hmax(v):                          # max over the 3 dx taps (lane chunks)
        return jnp.maximum(jnp.maximum(v[..., 0:wq], v[..., wq:2 * wq]),
                           v[..., 2 * wq:3 * wq])

    he = hmax(e3)                         # (B, hp+1, wq): even conv rows
    ho = hmax(o3)                         # (B, hp,   wq): odd  conv rows
    y = jnp.maximum(jnp.maximum(he[:, 0:hp], ho), he[:, 1:hp + 1])

    # --- two residual blocks: relu->conv->bn->relu->conv->bn->(+x) -----------
    zrow = jnp.zeros((bb, 1, wq), f32)

    def conv_bn(v, k):
        vp = jnp.concatenate([zrow, v, zrow], axis=1)             # H-pad by 1
        l = jnp.concatenate([vp[:, 0:hp], vp[:, 1:hp + 1], vp[:, 2:hp + 2]],
                            axis=-1)                               # (B, hp, 3*wq)
        a = jnp.dot(l.reshape(bb * hp, 3 * wq).astype(mdt), bres_ref[k],
                    preferred_element_type=f32)
        return (a * sres_ref[k] + tres_ref[k]).reshape(bb, hp, wq)

    for rb in range(2):
        h = conv_bn(jnp.maximum(y, 0.0), 2 * rb)
        h = conv_bn(jnp.maximum(h, 0.0), 2 * rb + 1)
        y = y + h

    out_ref[...] = y.astype(out_ref.dtype)    # (B, hp, Wp*Cout), rows contiguous


# ----------------------------------------------------------------------------
# Wrapper-side weight preparation (pure XLA on tiny weight tensors)
# ----------------------------------------------------------------------------
def _banded_matrix(w_oihw, w_in, starts):
    """3x3 OIHW conv weights -> (3*w_in*cin, len(starts)*cout) banded matrix.

    Output column (q, co) computes sum_{dy,dx,ci} x[r+dy, starts[q]+dx, ci] *
    W[co, ci, dy, dx] with out-of-range input columns treated as zero; the LHS
    row is the lane concat [x[r], x[r+1], x[r+2]] with (w, ci) packed per row.
    """
    cout, cin = int(w_oihw.shape[0]), int(w_oihw.shape[1])
    q = len(starts)
    sel = np.zeros((3, w_in, q), np.float32)
    for dx in range(3):
        for j, s0 in enumerate(starts):
            xi = int(s0) + dx
            if 0 <= xi < w_in:
                sel[dx, xi, j] = 1.0
    w_hwio = jnp.transpose(w_oihw, (2, 3, 1, 0))          # (dy, dx, ci, co)
    b = jnp.einsum('dpq,ydio->ypiqo', sel, w_hwio)        # (dy, w, ci, q, co)
    return b.reshape(3 * w_in * cin, q * cout)


def _fold_bn_affine(conv_p, bn_p, reps):
    """Fold conv bias + eval-mode BN into a per-lane (1, reps*cout) affine."""
    s = bn_p["gamma"] / jnp.sqrt(bn_p["rvar"] + BN_EPS)
    t = (conv_p["b"] - bn_p["rmean"]) * s + bn_p["beta"]
    return jnp.tile(s, reps)[None, :], jnp.tile(t, reps)[None, :]


def _pick_batch_block(n, hp, wp, cout, w, cin, target_m=256):
    """Images per grid step: target MXU M ~ target_m, stay well inside VMEM,
    and keep >= 2 grid steps when possible so both v7x TensorCores get work."""
    per_img = ((hp + 2) * w * cin * 2 * 2 +              # x_even/x_odd (bf16, 2-buf)
               (2 * hp + 1) * 3 * wp * cout * 6 +        # conv1 LHS (bf16) + E/O (f32)
               hp * wp * cout * 4 * 4)                   # pooled / residual activations
    b_cap = max(1, (12 * 1024 * 1024) // max(per_img, 1))
    b = max(1, min(n, -(-target_m // hp), b_cap))
    steps = -(-n // b)
    if steps == 1 and n >= 2:
        steps, b = 2, -(-n // 2)
    return b, steps


# ----------------------------------------------------------------------------
# Full ImpalaBlock forward (single fused pallas_call)
# ----------------------------------------------------------------------------
def impala_block_pallas(x_nchw, params, *, use_bf16=True):
    n, cin, h, w = x_nchw.shape
    cout = params["conv1"]["w"].shape[0]
    h1, w1 = h - 2, w - 2                          # conv1 (VALID) output dims
    assert h1 >= 3 and w1 >= 3, "input too small for the 3x3/2 maxpool"
    hp, wp = (h1 - 3) // 2 + 1, (w1 - 3) // 2 + 1  # after maxpool(3, 2)
    mdt = jnp.bfloat16 if use_bf16 else jnp.float32

    # NCHW -> lane-dense (N, H, W*Cin) rows, split into even / odd input rows
    # (the conv-row / pool-row interleave then becomes plain slices in-kernel).
    x = jnp.transpose(x_nchw, (0, 2, 3, 1)).reshape(n, h, w * cin)
    xe = x[:, 0:2 * hp + 3:2, :]                   # rows 0,2,...,2hp+2 -> hp+2
    xo = x[:, 1:2 * hp + 2:2, :]                   # rows 1,3,...,2hp+1 -> hp+1

    b_blk, steps = _pick_batch_block(n, hp, wp, cout, w, cin)
    npad = b_blk * steps
    if npad > n:
        xe = jnp.pad(xe, ((0, npad - n), (0, 0), (0, 0)))
        xo = jnp.pad(xo, ((0, npad - n), (0, 0), (0, 0)))
    xe = xe.astype(mdt)
    xo = xo.astype(mdt)

    # conv1 banded matrix emits, for each pooled column m, the 3 horizontal
    # pool taps (conv columns 2m, 2m+1, 2m+2) as 3 separate lane chunks.
    starts1 = [2 * m + d for d in range(3) for m in range(wp)]
    b1 = _banded_matrix(params["conv1"]["w"], w, starts1).astype(mdt)
    s1, t1 = _fold_bn_affine(params["conv1"], params["bn"], 3 * wp)

    starts_r = [m - 1 for m in range(wp)]          # padding=1 folded into band
    bres, sres, tres = [], [], []
    for rb in ("res1", "res2"):
        p = params[rb]
        for cname, bname in (("conv1", "bn1"), ("conv2", "bn2")):
            bres.append(_banded_matrix(p[cname]["w"], wp, starts_r))
            s, t = _fold_bn_affine(p[cname], p[bname], wp)
            sres.append(s)
            tres.append(t)
    bres = jnp.stack(bres).astype(mdt)             # (4, 3*Wp*C, Wp*C)
    sres = jnp.stack(sres)                         # (4, 1, Wp*C)
    tres = jnp.stack(tres)                         # (4, 1, Wp*C)

    out = pl.pallas_call(
        _impala_block_kernel,
        out_shape=jax.ShapeDtypeStruct((npad, hp, wp * cout), jnp.float32),
        grid=(steps,),
        in_specs=[
            pl.BlockSpec((b_blk, hp + 2, w * cin), lambda i: (i, 0, 0)),
            pl.BlockSpec((b_blk, hp + 1, w * cin), lambda i: (i, 0, 0)),
            # invariant weights / affines: full-array blocks, constant index_map
            pl.BlockSpec(b1.shape, lambda i: (0, 0)),
            pl.BlockSpec(s1.shape, lambda i: (0, 0)),
            pl.BlockSpec(t1.shape, lambda i: (0, 0)),
            pl.BlockSpec(bres.shape, lambda i: (0, 0, 0)),
            pl.BlockSpec(sres.shape, lambda i: (0, 0, 0)),
            pl.BlockSpec(tres.shape, lambda i: (0, 0, 0)),
        ],
        out_specs=pl.BlockSpec((b_blk, hp, wp * cout), lambda i: (i, 0, 0)),
        compiler_params=pltpu.CompilerParams(
            dimension_semantics=("parallel",),     # batch split across TCs (v7x)
            vmem_limit_bytes=32 * 1024 * 1024,     # well above the few MiB used
        ),
    )(xe, xo, b1, s1, t1, bres, sres, tres)

    # (Npad, hp, Wp*C) -> NCHW, dropping batch padding
    out = out[:n].reshape(n, hp, wp, cout)
    return jnp.transpose(out, (0, 3, 1, 2))


# ----------------------------------------------------------------------------
# Parameters (deterministic, PyTorch layouts: conv weight OIHW)
# ----------------------------------------------------------------------------
def init_params(key, in_channels, out_channels):
    keys = iter(jax.random.split(key, 40))

    def conv(cin, cout):
        return {"w": 0.1 * jax.random.normal(next(keys), (cout, cin, 3, 3), jnp.float32),
                "b": 0.1 * jax.random.normal(next(keys), (cout,), jnp.float32)}

    def bn(c):
        return {"gamma": 1.0 + 0.1 * jax.random.normal(next(keys), (c,), jnp.float32),
                "beta": 0.1 * jax.random.normal(next(keys), (c,), jnp.float32),
                "rmean": 0.1 * jax.random.normal(next(keys), (c,), jnp.float32),
                "rvar": 0.5 + jnp.abs(jax.random.normal(next(keys), (c,), jnp.float32))}

    def resblock(c):
        return {"conv1": conv(c, c), "bn1": bn(c), "conv2": conv(c, c), "bn2": bn(c)}

    return {"conv1": conv(in_channels, out_channels), "bn": bn(out_channels),
            "res1": resblock(out_channels), "res2": resblock(out_channels)}


# ----------------------------------------------------------------------------
# Pure-JAX reference (NCHW, mirrors the PyTorch module, eval-mode BN)
# ----------------------------------------------------------------------------
def _ref_conv(x, p, pad):
    return lax.conv_general_dilated(
        x, p["w"], window_strides=(1, 1), padding=[(pad, pad), (pad, pad)],
        dimension_numbers=("NCHW", "OIHW", "NCHW")) + p["b"][None, :, None, None]


def _ref_bn(x, p):
    s = (p["gamma"] / jnp.sqrt(p["rvar"] + BN_EPS))[None, :, None, None]
    return (x - p["rmean"][None, :, None, None]) * s + p["beta"][None, :, None, None]


def _ref_resblock(x, p):
    out = jax.nn.relu(x)
    out = _ref_bn(_ref_conv(out, p["conv1"], 1), p["bn1"])
    out = jax.nn.relu(out)
    out = _ref_bn(_ref_conv(out, p["conv2"], 1), p["bn2"])
    return out + x


def impala_block_ref(x, params):
    x = _ref_bn(_ref_conv(x, params["conv1"], 0), params["bn"])
    x = lax.reduce_window(x, -jnp.inf, lax.max, (1, 1, 3, 3), (1, 1, 2, 2), "VALID")
    x = _ref_resblock(x, params["res1"])
    x = _ref_resblock(x, params["res2"])
    return x


# ----------------------------------------------------------------------------
if __name__ == "__main__":
    key = jax.random.PRNGKey(0)
    k_x, k_p = jax.random.split(key)
    in_channels, out_channels = 4, 8
    x = jax.random.normal(k_x, (2, in_channels, 16, 16), jnp.float32)   # NCHW
    params = init_params(k_p, in_channels, out_channels)

    out = jax.jit(impala_block_pallas)(x, params)
    out = jax.block_until_ready(out)

    ref = impala_block_ref(x, params)
    assert out.shape == (2, out_channels, 6, 6), out.shape
    max_err = float(jnp.max(jnp.abs(out - ref)))
    # bf16 MXU inputs (f32 accumulate): tolerance reflects bf16 conv accuracy,
    # not f32.  Typical max|err| here is ~1e-2.
    assert jnp.allclose(out, ref, atol=5e-2, rtol=5e-2), max_err
    print("KERNEL_OK")
</pallas_src>

<mosaic_0001>
module attributes {stable_mosaic.version = 11 : i64} {
  func.func @_impala_block_kernel(%arg0: i32, %arg1: memref<1x8x64xbf16, #tpu.memory_space<vmem>>, %arg2: memref<1x7x64xbf16, #tpu.memory_space<vmem>>, %arg3: memref<192x144xbf16, #tpu.memory_space<vmem>>, %arg4: memref<1x144xf32, #tpu.memory_space<vmem>>, %arg5: memref<1x144xf32, #tpu.memory_space<vmem>>, %arg6: memref<4x144x48xbf16, #tpu.memory_space<vmem>>, %arg7: memref<4x1x48xf32, #tpu.memory_space<vmem>>, %arg8: memref<4x1x48xf32, #tpu.memory_space<vmem>>, %arg9: memref<1x6x48xf32, #tpu.memory_space<vmem>>) attributes {dimension_semantics = [#tpu.dimension_semantics<parallel>], iteration_bounds = array<i64: 2>, scalar_prefetch = 0 : i64, scratch_operands = 0 : i64, tpu.core_type = #tpu.core_type<tc>, window_params = [{transform_indices = @transform_0, window_bounds = array<i64: 1, 8, 64>}, {transform_indices = @transform_1, window_bounds = array<i64: 1, 7, 64>}, {pipeline_mode = #tpu.pipeline_mode<synchronous>, transform_indices = @transform_2, window_bounds = array<i64: 192, 144>}, {pipeline_mode = #tpu.pipeline_mode<synchronous>, transform_indices = @transform_3, window_bounds = array<i64: 1, 144>}, {pipeline_mode = #tpu.pipeline_mode<synchronous>, transform_indices = @transform_4, window_bounds = array<i64: 1, 144>}, {pipeline_mode = #tpu.pipeline_mode<synchronous>, transform_indices = @transform_5, window_bounds = array<i64: 4, 144, 48>}, {pipeline_mode = #tpu.pipeline_mode<synchronous>, transform_indices = @transform_6, window_bounds = array<i64: 4, 1, 48>}, {pipeline_mode = #tpu.pipeline_mode<synchronous>, transform_indices = @transform_7, window_bounds = array<i64: 4, 1, 48>}, {transform_indices = @transform_8, window_bounds = array<i64: 1, 6, 48>}]} {
    %c0 = arith.constant 0 : index
    %c0_0 = arith.constant 0 : index
    %c0_1 = arith.constant 0 : index
    %0 = vector.load %arg1[%c0, %c0_0, %c0_1] : memref<1x8x64xbf16, #tpu.memory_space<vmem>>, vector<1x8x64xbf16>
    %c0_2 = arith.constant 0 : index
    %c0_3 = arith.constant 0 : index
    %c0_4 = arith.constant 0 : index
    %1 = vector.load %arg2[%c0_2, %c0_3, %c0_4] : memref<1x7x64xbf16, #tpu.memory_space<vmem>>, vector<1x7x64xbf16>
    %2 = vector.extract_strided_slice %0 {offsets = [0, 0, 0], sizes = [1, 7, 64], strides = [1, 1, 1]} : vector<1x8x64xbf16> to vector<1x7x64xbf16>
    %3 = vector.extract_strided_slice %0 {offsets = [0, 1, 0], sizes = [1, 7, 64], strides = [1, 1, 1]} : vector<1x8x64xbf16> to vector<1x7x64xbf16>
    %4 = tpu.concatenate %2, %1, %3 in 2 : vector<1x7x64xbf16>, vector<1x7x64xbf16>, vector<1x7x64xbf16> -> vector<1x7x192xbf16>
    %5 = vector.extract_strided_slice %1 {offsets = [0, 0, 0], sizes = [1, 6, 64], strides = [1, 1, 1]} : vector<1x7x64xbf16> to vector<1x6x64xbf16>
    %6 = vector.extract_strided_slice %0 {offsets = [0, 1, 0], sizes = [1, 6, 64], strides = [1, 1, 1]} : vector<1x8x64xbf16> to vector<1x6x64xbf16>
    %7 = vector.extract_strided_slice %1 {offsets = [0, 1, 0], sizes = [1, 6, 64], strides = [1, 1, 1]} : vector<1x7x64xbf16> to vector<1x6x64xbf16>
    %8 = tpu.concatenate %5, %6, %7 in 2 : vector<1x6x64xbf16>, vector<1x6x64xbf16>, vector<1x6x64xbf16> -> vector<1x6x192xbf16>
    %c0_5 = arith.constant 0 : index
    %c0_6 = arith.constant 0 : index
    %9 = vector.load %arg3[%c0_5, %c0_6] : memref<192x144xbf16, #tpu.memory_space<vmem>>, vector<192x144xbf16>
    %10 = vector.shape_cast %4 : vector<1x7x192xbf16> to vector<7x192xbf16>
    %cst = arith.constant dense<0.000000e+00> : vector<7x144xf32>
    %11 = tpu.matmul %10, %9, %cst {dimension_numbers = #tpu.dot_dimension_numbers<[1], [0], [0], [1], [0, 0, 1, 1], [], []>} : vector<7x192xbf16>, vector<192x144xbf16>, vector<7x144xf32> -> vector<7x144xf32>
    %12 = vector.shape_cast %8 : vector<1x6x192xbf16> to vector<6x192xbf16>
    %cst_7 = arith.constant dense<0.000000e+00> : vector<6x144xf32>
    %13 = tpu.matmul %12, %9, %cst_7 {dimension_numbers = #tpu.dot_dimension_numbers<[1], [0], [0], [1], [0, 0, 1, 1], [], []>} : vector<6x192xbf16>, vector<192x144xbf16>, vector<6x144xf32> -> vector<6x144xf32>
    %c0_8 = arith.constant 0 : index
    %c0_9 = arith.constant 0 : index
    %14 = vector.load %arg4[%c0_8, %c0_9] : memref<1x144xf32, #tpu.memory_space<vmem>>, vector<1x144xf32>
    %15 = vector.broadcast %14 : vector<1x144xf32> to vector<7x144xf32>
    %16 = arith.mulf %11, %15 : vector<7x144xf32>
    %c0_10 = arith.constant 0 : index
    %c0_11 = arith.constant 0 : index
    %17 = vector.load %arg5[%c0_10, %c0_11] : memref<1x144xf32, #tpu.memory_space<vmem>>, vector<1x144xf32>
    %18 = vector.broadcast %17 : vector<1x144xf32> to vector<7x144xf32>
    %19 = arith.addf %16, %18 : vector<7x144xf32>
    %c0_12 = arith.constant 0 : index
    %c0_13 = arith.constant 0 : index
    %20 = vector.load %arg4[%c0_12, %c0_13] : memref<1x144xf32, #tpu.memory_space<vmem>>, vector<1x144xf32>
    %21 = vector.broadcast %20 : vector<1x144xf32> to vector<6x144xf32>
    %22 = arith.mulf %13, %21 : vector<6x144xf32>
    %c0_14 = arith.constant 0 : index
    %c0_15 = arith.constant 0 : index
    %23 = vector.load %arg5[%c0_14, %c0_15] : memref<1x144xf32, #tpu.memory_space<vmem>>, vector<1x144xf32>
    %24 = vector.broadcast %23 : vector<1x144xf32> to vector<6x144xf32>
    %25 = arith.addf %22, %24 : vector<6x144xf32>
    %26 = vector.shape_cast %19 : vector<7x144xf32> to vector<1x7x144xf32>
    %27 = vector.shape_cast %25 : vector<6x144xf32> to vector<1x6x144xf32>
    %28 = vector.extract_strided_slice %26 {offsets = [0, 0, 0], sizes = [1, 7, 48], strides = [1, 1, 1]} : vector<1x7x144xf32> to vector<1x7x48xf32>
    %29 = vector.extract_strided_slice %26 {offsets = [0, 0, 48], sizes = [1, 7, 48], strides = [1, 1, 1]} : vector<1x7x144xf32> to vector<1x7x48xf32>
    %30 = arith.maximumf %28, %29 : vector<1x7x48xf32>
    %31 = vector.extract_strided_slice %26 {offsets = [0, 0, 96], sizes = [1, 7, 48], strides = [1, 1, 1]} : vector<1x7x144xf32> to vector<1x7x48xf32>
    %32 = arith.maximumf %30, %31 : vector<1x7x48xf32>
    %33 = vector.extract_strided_slice %27 {offsets = [0, 0, 0], sizes = [1, 6, 48], strides = [1, 1, 1]} : vector<1x6x144xf32> to vector<1x6x48xf32>
    %34 = vector.extract_strided_slice %27 {offsets = [0, 0, 48], sizes = [1, 6, 48], strides = [1, 1, 1]} : vector<1x6x144xf32> to vector<1x6x48xf32>
    %35 = arith.maximumf %33, %34 : vector<1x6x48xf32>
    %36 = vector.extract_strided_slice %27 {offsets = [0, 0, 96], sizes = [1, 6, 48], strides = [1, 1, 1]} : vector<1x6x144xf32> to vector<1x6x48xf32>
    %37 = arith.maximumf %35, %36 : vector<1x6x48xf32>
    %38 = vector.extract_strided_slice %32 {offsets = [0, 0, 0], sizes = [1, 6, 48], strides = [1, 1, 1]} : vector<1x7x48xf32> to vector<1x6x48xf32>
    %39 = arith.maximumf %38, %37 : vector<1x6x48xf32>
    %40 = vector.extract_strided_slice %32 {offsets = [0, 1, 0], sizes = [1, 6, 48], strides = [1, 1, 1]} : vector<1x7x48xf32> to vector<1x6x48xf32>
    %41 = arith.maximumf %39, %40 : vector<1x6x48xf32>
    %cst_16 = arith.constant 0.000000e+00 : f32
    %42 = vector.broadcast %cst_16 : f32 to vector<1x1x48xf32>
    %cst_17 = arith.constant 0.000000e+00 : f32
    %43 = vector.broadcast %cst_17 : f32 to vector<1x6x48xf32>
    %44 = arith.maximumf %41, %43 : vector<1x6x48xf32>
    %45 = tpu.concatenate %42, %44, %42 in 1 : vector<1x1x48xf32>, vector<1x6x48xf32>, vector<1x1x48xf32> -> vector<1x8x48xf32>
    %46 = vector.extract_strided_slice %45 {offsets = [0, 0, 0], sizes = [1, 6, 48], strides = [1, 1, 1]} : vector<1x8x48xf32> to vector<1x6x48xf32>
    %47 = vector.extract_strided_slice %45 {offsets = [0, 1, 0], sizes = [1, 6, 48], strides = [1, 1, 1]} : vector<1x8x48xf32> to vector<1x6x48xf32>
    %48 = vector.extract_strided_slice %45 {offsets = [0, 2, 0], sizes = [1, 6, 48], strides = [1, 1, 1]} : vector<1x8x48xf32> to vector<1x6x48xf32>
    %49 = tpu.concatenate %46, %47, %48 in 2 : vector<1x6x48xf32>, vector<1x6x48xf32>, vector<1x6x48xf32> -> vector<1x6x144xf32>
    %50 = vector.shape_cast %49 : vector<1x6x144xf32> to vector<6x144xf32>
    %51 = arith.truncf %50 : vector<6x144xf32> to vector<6x144xbf16>
    %c0_18 = arith.constant 0 : index
    %c0_19 = arith.constant 0 : index
    %c0_20 = arith.constant 0 : index
    %52 = vector.load %arg6[%c0_18, %c0_19, %c0_20] : memref<4x144x48xbf16, #tpu.memory_space<vmem>>, vector<1x144x48xbf16>
    %53 = vector.shape_cast %52 : vector<1x144x48xbf16> to vector<144x48xbf16>
    %cst_21 = arith.constant dense<0.000000e+00> : vector<6x48xf32>
    %54 = tpu.matmul %51, %53, %cst_21 {dimension_numbers = #tpu.dot_dimension_numbers<[1], [0], [0], [1], [0, 0, 1, 1], [], []>} : vector<6x144xbf16>, vector<144x48xbf16>, vector<6x48xf32> -> vector<6x48xf32>
    %c0_22 = arith.constant 0 : index
    %c0_23 = arith.constant 0 : index
    %c0_24 = arith.constant 0 : index
    %55 = vector.load %arg7[%c0_22, %c0_23, %c0_24] : memref<4x1x48xf32, #tpu.memory_space<vmem>>, vector<1x1x48xf32>
    %56 = vector.shape_cast %55 : vector<1x1x48xf32> to vector<1x48xf32>
    %57 = vector.broadcast %56 : vector<1x48xf32> to vector<6x48xf32>
    %58 = arith.mulf %54, %57 : vector<6x48xf32>
    %c0_25 = arith.constant 0 : index
    %c0_26 = arith.constant 0 : index
    %c0_27 = arith.constant 0 : index
    %59 = vector.load %arg8[%c0_25, %c0_26, %c0_27] : memref<4x1x48xf32, #tpu.memory_space<vmem>>, vector<1x1x48xf32>
    %60 = vector.shape_cast %59 : vector<1x1x48xf32> to vector<1x48xf32>
    %61 = vector.broadcast %60 : vector<1x48xf32> to vector<6x48xf32>
    %62 = arith.addf %58, %61 : vector<6x48xf32>
    %63 = vector.shape_cast %62 : vector<6x48xf32> to vector<1x6x48xf32>
    %cst_28 = arith.constant 0.000000e+00 : f32
    %64 = vector.broadcast %cst_28 : f32 to vector<1x6x48xf32>
    %65 = arith.maximumf %63, %64 : vector<1x6x48xf32>
    %66 = tpu.concatenate %42, %65, %42 in 1 : vector<1x1x48xf32>, vector<1x6x48xf32>, vector<1x1x48xf32> -> vector<1x8x48xf32>
    %67 = vector.extract_strided_slice %66 {offsets = [0, 0, 0], sizes = [1, 6, 48], strides = [1, 1, 1]} : vector<1x8x48xf32> to vector<1x6x48xf32>
    %68 = vector.extract_strided_slice %66 {offsets = [0, 1, 0], sizes = [1, 6, 48], strides = [1, 1, 1]} : vector<1x8x48xf32> to vector<1x6x48xf32>
    %69 = vector.extract_strided_slice %66 {offsets = [0, 2, 0], sizes = [1, 6, 48], strides = [1, 1, 1]} : vector<1x8x48xf32> to vector<1x6x48xf32>
    %70 = tpu.concatenate %67, %68, %69 in 2 : vector<1x6x48xf32>, vector<1x6x48xf32>, vector<1x6x48xf32> -> vector<1x6x144xf32>
    %71 = vector.shape_cast %70 : vector<1x6x144xf32> to vector<6x144xf32>
    %72 = arith.truncf %71 : vector<6x144xf32> to vector<6x144xbf16>
    %c1 = arith.constant 1 : index
    %c0_29 = arith.constant 0 : index
    %c0_30 = arith.constant 0 : index
    %73 = vector.load %arg6[%c1, %c0_29, %c0_30] : memref<4x144x48xbf16, #tpu.memory_space<vmem>>, vector<1x144x48xbf16>
    %74 = vector.shape_cast %73 : vector<1x144x48xbf16> to vector<144x48xbf16>
    %cst_31 = arith.constant dense<0.000000e+00> : vector<6x48xf32>
    %75 = tpu.matmul %72, %74, %cst_31 {dimension_numbers = #tpu.dot_dimension_numbers<[1], [0], [0], [1], [0, 0, 1, 1], [], []>} : vector<6x144xbf16>, vector<144x48xbf16>, vector<6x48xf32> -> vector<6x48xf32>
    %c1_32 = arith.constant 1 : index
    %c0_33 = arith.constant 0 : index
    %c0_34 = arith.constant 0 : index
    %76 = vector.load %arg7[%c1_32, %c0_33, %c0_34] : memref<4x1x48xf32, #tpu.memory_space<vmem>>, vector<1x1x48xf32>
    %77 = vector.shape_cast %76 : vector<1x1x48xf32> to vector<1x48xf32>
    %78 = vector.broadcast %77 : vector<1x48xf32> to vector<6x48xf32>
    %79 = arith.mulf %75, %78 : vector<6x48xf32>
    %c1_35 = arith.constant 1 : index
    %c0_36 = arith.constant 0 : index
    %c0_37 = arith.constant 0 : index
    %80 = vector.load %arg8[%c1_35, %c0_36, %c0_37] : memref<4x1x48xf32, #tpu.memory_space<vmem>>, vector<1x1x48xf32>
    %81 = vector.shape_cast %80 : vector<1x1x48xf32> to vector<1x48xf32>
    %82 = vector.broadcast %81 : vector<1x48xf32> to vector<6x48xf32>
    %83 = arith.addf %79, %82 : vector<6x48xf32>
    %84 = vector.shape_cast %83 : vector<6x48xf32> to vector<1x6x48xf32>
    %85 = arith.addf %41, %84 : vector<1x6x48xf32>
    %cst_38 = arith.constant 0.000000e+00 : f32
    %86 = vector.broadcast %cst_38 : f32 to vector<1x6x48xf32>
    %87 = arith.maximumf %85, %86 : vector<1x6x48xf32>
    %88 = tpu.concatenate %42, %87, %42 in 1 : vector<1x1x48xf32>, vector<1x6x48xf32>, vector<1x1x48xf32> -> vector<1x8x48xf32>
    %89 = vector.extract_strided_slice %88 {offsets = [0, 0, 0], sizes = [1, 6, 48], strides = [1, 1, 1]} : vector<1x8x48xf32> to vector<1x6x48xf32>
    %90 = vector.extract_strided_slice %88 {offsets = [0, 1, 0], sizes = [1, 6, 48], strides = [1, 1, 1]} : vector<1x8x48xf32> to vector<1x6x48xf32>
    %91 = vector.extract_strided_slice %88 {offsets = [0, 2, 0], sizes = [1, 6, 48], strides = [1, 1, 1]} : vector<1x8x48xf32> to vector<1x6x48xf32>
    %92 = tpu.concatenate %89, %90, %91 in 2 : vector<1x6x48xf32>, vector<1x6x48xf32>, vector<1x6x48xf32> -> vector<1x6x144xf32>
    %93 = vector.shape_cast %92 : vector<1x6x144xf32> to vector<6x144xf32>
    %94 = arith.truncf %93 : vector<6x144xf32> to vector<6x144xbf16>
    %c2 = arith.constant 2 : index
    %c0_39 = arith.constant 0 : index
    %c0_40 = arith.constant 0 : index
    %95 = vector.load %arg6[%c2, %c0_39, %c0_40] : memref<4x144x48xbf16, #tpu.memory_space<vmem>>, vector<1x144x48xbf16>
    %96 = vector.shape_cast %95 : vector<1x144x48xbf16> to vector<144x48xbf16>
    %cst_41 = arith.constant dense<0.000000e+00> : vector<6x48xf32>
    %97 = tpu.matmul %94, %96, %cst_41 {dimension_numbers = #tpu.dot_dimension_numbers<[1], [0], [0], [1], [0, 0, 1, 1], [], []>} : vector<6x144xbf16>, vector<144x48xbf16>, vector<6x48xf32> -> vector<6x48xf32>
    %c2_42 = arith.constant 2 : index
    %c0_43 = arith.constant 0 : index
    %c0_44 = arith.constant 0 : index
    %98 = vector.load %arg7[%c2_42, %c0_43, %c0_44] : memref<4x1x48xf32, #tpu.memory_space<vmem>>, vector<1x1x48xf32>
    %99 = vector.shape_cast %98 : vector<1x1x48xf32> to vector<1x48xf32>
    %100 = vector.broadcast %99 : vector<1x48xf32> to vector<6x48xf32>
    %101 = arith.mulf %97, %100 : vector<6x48xf32>
    %c2_45 = arith.constant 2 : index
    %c0_46 = arith.constant 0 : index
    %c0_47 = arith.constant 0 : index
    %102 = vector.load %arg8[%c2_45, %c0_46, %c0_47] : memref<4x1x48xf32, #tpu.memory_space<vmem>>, vector<1x1x48xf32>
    %103 = vector.shape_cast %102 : vector<1x1x48xf32> to vector<1x48xf32>
    %104 = vector.broadcast %103 : vector<1x48xf32> to vector<6x48xf32>
    %105 = arith.addf %101, %104 : vector<6x48xf32>
    %106 = vector.shape_cast %105 : vector<6x48xf32> to vector<1x6x48xf32>
    %cst_48 = arith.constant 0.000000e+00 : f32
    %107 = vector.broadcast %cst_48 : f32 to vector<1x6x48xf32>
    %108 = arith.maximumf %106, %107 : vector<1x6x48xf32>
    %109 = tpu.concatenate %42, %108, %42 in 1 : vector<1x1x48xf32>, vector<1x6x48xf32>, vector<1x1x48xf32> -> vector<1x8x48xf32>
    %110 = vector.extract_strided_slice %109 {offsets = [0, 0, 0], sizes = [1, 6, 48], strides = [1, 1, 1]} : vector<1x8x48xf32> to vector<1x6x48xf32>
    %111 = vector.extract_strided_slice %109 {offsets = [0, 1, 0], sizes = [1, 6, 48], strides = [1, 1, 1]} : vector<1x8x48xf32> to vector<1x6x48xf32>
    %112 = vector.extract_strided_slice %109 {offsets = [0, 2, 0], sizes = [1, 6, 48], strides = [1, 1, 1]} : vector<1x8x48xf32> to vector<1x6x48xf32>
    %113 = tpu.concatenate %110, %111, %112 in 2 : vector<1x6x48xf32>, vector<1x6x48xf32>, vector<1x6x48xf32> -> vector<1x6x144xf32>
    %114 = vector.shape_cast %113 : vector<1x6x144xf32> to vector<6x144xf32>
    %115 = arith.truncf %114 : vector<6x144xf32> to vector<6x144xbf16>
    %c3 = arith.constant 3 : index
    %c0_49 = arith.constant 0 : index
    %c0_50 = arith.constant 0 : index
    %116 = vector.load %arg6[%c3, %c0_49, %c0_50] : memref<4x144x48xbf16, #tpu.memory_space<vmem>>, vector<1x144x48xbf16>
    %117 = vector.shape_cast %116 : vector<1x144x48xbf16> to vector<144x48xbf16>
    %cst_51 = arith.constant dense<0.000000e+00> : vector<6x48xf32>
    %118 = tpu.matmul %115, %117, %cst_51 {dimension_numbers = #tpu.dot_dimension_numbers<[1], [0], [0], [1], [0, 0, 1, 1], [], []>} : vector<6x144xbf16>, vector<144x48xbf16>, vector<6x48xf32> -> vector<6x48xf32>
    %c3_52 = arith.constant 3 : index
    %c0_53 = arith.constant 0 : index
    %c0_54 = arith.constant 0 : index
    %119 = vector.load %arg7[%c3_52, %c0_53, %c0_54] : memref<4x1x48xf32, #tpu.memory_space<vmem>>, vector<1x1x48xf32>
    %120 = vector.shape_cast %119 : vector<1x1x48xf32> to vector<1x48xf32>
    %121 = vector.broadcast %120 : vector<1x48xf32> to vector<6x48xf32>
    %122 = arith.mulf %118, %121 : vector<6x48xf32>
    %c3_55 = arith.constant 3 : index
    %c0_56 = arith.constant 0 : index
    %c0_57 = arith.constant 0 : index
    %123 = vector.load %arg8[%c3_55, %c0_56, %c0_57] : memref<4x1x48xf32, #tpu.memory_space<vmem>>, vector<1x1x48xf32>
    %124 = vector.shape_cast %123 : vector<1x1x48xf32> to vector<1x48xf32>
    %125 = vector.broadcast %124 : vector<1x48xf32> to vector<6x48xf32>
    %126 = arith.addf %122, %125 : vector<6x48xf32>
    %127 = vector.shape_cast %126 : vector<6x48xf32> to vector<1x6x48xf32>
    %128 = arith.addf %85, %127 : vector<1x6x48xf32>
    %c0_58 = arith.constant 0 : index
    %c0_59 = arith.constant 0 : index
    %c0_60 = arith.constant 0 : index
    %129 = vector.load %arg9[%c0_58, %c0_59, %c0_60] : memref<1x6x48xf32, #tpu.memory_space<vmem>>, vector<1x6x48xf32>
    tpu.vector_store %arg9[%c0_58, %c0_59, %c0_60], %128 {strides = array<i32>} : memref<1x6x48xf32, #tpu.memory_space<vmem>>, vector<1x6x48xf32>,
    return
  }
  func.func @transform_0(%arg0: i32) -> (i32, i32, i32) {
    %c0_i32 = arith.constant 0 : i32
    %c0_i32_0 = arith.constant 0 : i32
    %c0_i32_1 = arith.constant 0 : i32
    return %arg0, %c0_i32, %c0_i32_0 : i32, i32, i32
  }
  func.func @transform_1(%arg0: i32) -> (i32, i32, i32) {
    %c0_i32 = arith.constant 0 : i32
    %c0_i32_0 = arith.constant 0 : i32
    %c0_i32_1 = arith.constant 0 : i32
    return %arg0, %c0_i32, %c0_i32_0 : i32, i32, i32
  }
  func.func @transform_2(%arg0: i32) -> (i32, i32) {
    %c0_i32 = arith.constant 0 : i32
    %c0_i32_0 = arith.constant 0 : i32
    %c0_i32_1 = arith.constant 0 : i32
    return %c0_i32, %c0_i32_0 : i32, i32
  }
  func.func @transform_3(%arg0: i32) -> (i32, i32) {
    %c0_i32 = arith.constant 0 : i32
    %c0_i32_0 = arith.constant 0 : i32
    %c0_i32_1 = arith.constant 0 : i32
    return %c0_i32, %c0_i32_0 : i32, i32
  }
  func.func @transform_4(%arg0: i32) -> (i32, i32) {
    %c0_i32 = arith.constant 0 : i32
    %c0_i32_0 = arith.constant 0 : i32
    %c0_i32_1 = arith.constant 0 : i32
    return %c0_i32, %c0_i32_0 : i32, i32
  }
  func.func @transform_5(%arg0: i32) -> (i32, i32, i32) {
    %c0_i32 = arith.constant 0 : i32
    %c0_i32_0 = arith.constant 0 : i32
    %c0_i32_1 = arith.constant 0 : i32
    %c0_i32_2 = arith.constant 0 : i32
    return %c0_i32, %c0_i32_0, %c0_i32_1 : i32, i32, i32
  }
  func.func @transform_6(%arg0: i32) -> (i32, i32, i32) {
    %c0_i32 = arith.constant 0 : i32
    %c0_i32_0 = arith.constant 0 : i32
    %c0_i32_1 = arith.constant 0 : i32
    %c0_i32_2 = arith.constant 0 : i32
    return %c0_i32, %c0_i32_0, %c0_i32_1 : i32, i32, i32
  }
  func.func @transform_7(%arg0: i32) -> (i32, i32, i32) {
    %c0_i32 = arith.constant 0 : i32
    %c0_i32_0 = arith.constant 0 : i32
    %c0_i32_1 = arith.constant 0 : i32
    %c0_i32_2 = arith.constant 0 : i32
    return %c0_i32, %c0_i32_0, %c0_i32_1 : i32, i32, i32
  }
  func.func @transform_8(%arg0: i32) -> (i32, i32, i32) {
    %c0_i32 = arith.constant 0 : i32
    %c0_i32_0 = arith.constant 0 : i32
    %c0_i32_1 = arith.constant 0 : i32
    return %arg0, %c0_i32, %c0_i32_0 : i32, i32, i32
  }
}

</mosaic_0001>

<bundles_post_ra>
// kernel: tile.53
= control target key start
LH: loop header
LB: loop body
LE: loop exit
PB: predicated region body
PF: predicated region fallthrough
CT: control target
= control target key end

     0   :  { %s34_s0 = inlined_call_operand.vmem [shape: f32[8], index: 0, kind: input, shape index: {}]   ;;  %s35_s1 = inlined_call_operand.vmem [shape: f32[18,8], index: 1, kind: output, shape index: {}]  }
   0x1   :  { %v4_v0 = vld [vmem:[%s34_s0] ss:$0 sm:$0xff] }
   0x2   :  { %5 = vst [vmem:[%s35_s1] sm:$0xff] %v4_v0 }
   0x3   :  { %10 = vst [vmem:[%s35_s1 + $0x8] sm:$0xff] %v4_v0 }
   0x4   :  { %11 = vst [vmem:[%s35_s1 + $0x10] sm:$0xff] %v4_v0 }

// kernel: tile.54
= control target key start
LH: loop header
LB: loop body
LE: loop exit
PB: predicated region body
PF: predicated region fallthrough
CT: control target
= control target key end

     0   :  { %s140_s10 = smov 120   ;;  %s141_s11 = smov 104   ;;  %vm4_vm0 = vcmask 64512   ;;  %vm10_vm1 = vcmask 1048512   ;;  %vm16_vm2 = vcmask 982912   ;;  %vm22_vm3 = vcmask 917312   ;;  %s219_s0 = inlined_call_operand.vmem [shape: f32[18,8], index: 0, kind: input, shape index: {}]   ;;  %s220_s1 = inlined_call_operand.vmem [shape: f32[1,144], index: 1, kind: output, shape index: {}]  }
   0x1   :  { %v109_v0 = vld [vmem:[%s219_s0 + $0xf] sm:$0x1]   ;;  %v111_v1 = vld [vmem:[%s219_s0 + $0xd] sm:$0x1]   ;;  %v113_v2 = vld [vmem:[%s219_s0 + $0xb] sm:$0x1]  }
   0x2   :  { %8 = vrot.lane.b32.xlu0 %v109_v0, %s140_s10  ;;  %20 = vrot.lane.b32.xlu1 %v111_v1, %s141_s11  ;;  %s142_s14 = smov 88   ;;  %v110_v3 = vld [vmem:[%s219_s0 + $0xe] sm:$0x1]   ;;  %v112_v4 = vld [vmem:[%s219_s0 + $0xc] sm:$0x1]   ;;  %s143_s19 = smov 112  }
   0x3   :  { %32 = vrot.lane.b32.xlu2 %v113_v2, %s142_s14  ;;  %s144_s20 = smov 96   ;;  %v114_v5 = vld [vmem:[%s219_s0 + $0xa] sm:$0x1]   ;;  %s145_s23 = smov 80   ;;  %v115_v6 = vld [vmem:[%s219_s0 + $0x9] sm:$0x1]  }
   0x4   :  { %v116_v7 = vld [vmem:[%s219_s0 + $0x8] sm:$0x1]   ;;  %s146_s28 = smov 72   ;;  %s147_s29 = smov 64   ;;  %v117_v8 = vld [vmem:[%s219_s0 + $0x7] sm:$0x1]  }
   0x5   :  { %s148_s3 = smov 56   ;;  %v118_v9 = vld [vmem:[%s219_s0 + $0x6] sm:$0x1]   ;;  %v119_v10 = vld [vmem:[%s219_s0 + $0x5] sm:$0x1]   ;;  %s149_s8 = smov 48  }
   0x6   :  { %s150_s9 = smov 40   ;;  %v120_v11 = vld [vmem:[%s219_s0 + $0x4] sm:$0x1]   ;;  %s151_s12 = smov 32   ;;  %v121_v12 = vld [vmem:[%s219_s0 + $0x3] sm:$0x1]  }
   0x7   :  { %v122_v13 = vld [vmem:[%s219_s0 + $0x2] sm:$0x1]   ;;  %s91_s17 = smov 3  ;;  %s152_s18 = smov 24   ;;  %vm28_vm4 = vcmask 851712   ;;  %vm34_vm5 = vcmask 786112  }
   0x8   :  { %v123_v14 = vld [vmem:[%s219_s0 + $0x1] ss:$16 sm:%s91_s17]   ;;  %s154_s22 = smov 8   ;;  %vm40_vm6 = vcmask 720512   ;;  %vm46_vm7 = vcmask 654912   ;;  %vm52_vm8 = vcmask 589312  }
   0x9   :  { %vm58_vm9 = vcmask 523712   ;;  %vm64_vm10 = vcmask 458112   ;;  %vm70_vm11 = vcmask 392512   ;;  %vm76_vm12 = vcmask 326912  }
   0xa   :  { %14 = vrot.lane.b32.xlu0 %v110_v3, %s143_s19  ;;  %26 = vrot.lane.b32.xlu1 %v112_v4, %s144_s20  ;;  %s153_s19 = smov 16   ;;  %vm82_vm13 = vcmask 261312   ;;  %vm88_vm14 = vcmask 195712   ;;  %vm95_vm15 = vcmask 130112  }
   0xb   :  { %38 = vrot.lane.b32.xlu2 %v114_v5, %s145_s23  ;;  %s2_s23 = smov 3 }
   0xc   :  { %v3_v15 = vld [vmem:[%s219_s0] ss:$16 sm:%s2_s23]  }
   0xd   :  { %5 = vst.msk [vmem:[#allocation0] ss:$8 sm:$0x3] %vm4_vm0, %v3_v15  }
  0x12   :  { %44 = vrot.lane.b32.xlu0 %v115_v6, %s146_s28  ;;  %50 = vrot.lane.b32.xlu1 %v116_v7, %s147_s29 }
  0x13   :  { %56 = vrot.lane.b32.xlu2 %v117_v8, %s148_s3 }
  0x1a   :  { %62 = vrot.lane.b32.xlu0 %v118_v9, %s149_s8  ;;  %68 = vrot.lane.b32.xlu1 %v119_v10, %s150_s9 }
  0x1b   :  { %74 = vrot.lane.b32.xlu2 %v120_v11, %s151_s12 }
  0x22   :  { %80 = vrot.lane.b32.xlu0 %v121_v12, %s152_s18  ;;  %86 = vrot.lane.b32.xlu1 %v122_v13, %s153_s19 }
  0x23   :  { %93 = vrot.lane.b32.xlu2 %v123_v14, %s154_s22 }
  0x5d   :  { %v33_v16 = vpop.permute.xlu2 %32  }
  0x65   :  { %v39_v17 = vpop.permute.xlu2 %38  }
  0x6d   :  { %v57_v18 = vpop.permute.xlu2 %56  }
  0x74   :  { %v9_v19 = vpop.permute.xlu0 %8   ;;  %v21_v20 = vpop.permute.xlu1 %20  }
  0x75   :  { %11 = vst.msk [vmem:[#allocation0] sm:$0x1] %vm10_vm1, %v9_v19   ;;  %v75_v21 = vpop.permute.xlu2 %74  }
  0x7c   :  { %v15_v22 = vpop.permute.xlu0 %14   ;;  %v27_v23 = vpop.permute.xlu1 %26  }
  0x7d   :  { %17 = vst.msk [vmem:[#allocation0] sm:$0x1] %vm16_vm2, %v15_v22   ;;  %v94_v24 = vpop.permute.xlu2 %93  }
  0x7e   :  { %23 = vst.msk [vmem:[#allocation0] sm:$0x1] %vm22_vm3, %v21_v20  }
  0x7f   :  { %29 = vst.msk [vmem:[#allocation0] sm:$0x1] %vm28_vm4, %v27_v23  }
  0x80   :  { %35 = vst.msk [vmem:[#allocation0] sm:$0x1] %vm34_vm5, %v33_v16  }
  0x81   :  { %41 = vst.msk [vmem:[#allocation0] sm:$0x1] %vm40_vm6, %v39_v17  }
  0x84   :  { %v45_v25 = vpop.permute.xlu0 %44   ;;  %v51_v26 = vpop.permute.xlu1 %50  }
  0x85   :  { %47 = vst.msk [vmem:[#allocation0] sm:$0x1] %vm46_vm7, %v45_v25  }
  0x86   :  { %53 = vst.msk [vmem:[#allocation0] sm:$0x1] %vm52_vm8, %v51_v26  }
  0x87   :  { %59 = vst.msk [vmem:[#allocation0] sm:$0x1] %vm58_vm9, %v57_v18  }
  0x8c   :  { %v63_v27 = vpop.permute.xlu0 %62   ;;  %v69_v28 = vpop.permute.xlu1 %68  }
  0x8d   :  { %65 = vst.msk [vmem:[#allocation0] sm:$0x1] %vm64_vm10, %v63_v27  }
  0x8e   :  { %71 = vst.msk [vmem:[#allocation0] sm:$0x1] %vm70_vm11, %v69_v28  }
  0x8f   :  { %77 = vst.msk [vmem:[#allocation0] sm:$0x1] %vm76_vm12, %v75_v21  }
  0x94   :  { %v81_v29 = vpop.permute.xlu0 %80   ;;  %v87_v30 = vpop.permute.xlu1 %86  }
  0x95   :  { %83 = vst.msk [vmem:[#allocation0] sm:$0x1] %vm82_vm13, %v81_v29  }
  0x96   :  { %89 = vst.msk [vmem:[#allocation0] sm:$0x1] %vm88_vm14, %v87_v30  }
  0x97   :  { %96 = vst.msk [vmem:[#allocation0] ss:$8 sm:$0x3] %vm95_vm15, %v94_v24  }
  0x9e   :  { %v99_v31 = vld [vmem:[#allocation0] sm:$0x1]  ;;  %v104_v32 = vld [vmem:[#allocation0 + $0x8] sm:$0x1] }
  0x9f   :  { %102 = vst [vmem:[%s220_s1] sm:$0x1] %v99_v31 }
  0xa0   :  { %124 = vst [vmem:[%s220_s1 + $0x1] sm:$0x1] %v104_v32 }

// kernel: tile.87
= control target key start
LH: loop header
LB: loop body
LE: loop exit
PB: predicated region body
PF: predicated region fallthrough
CT: control target
= control target key end

     0   :  { %s22_s0 = inlined_call_operand.vmem [shape: f32[8], index: 0, kind: input, shape index: {}]   ;;  %s23_s1 = inlined_call_operand.vmem [shape: f32[6,8], index: 1, kind: output, shape index: {}]  }
   0x1   :  { %v4_v0 = vld [vmem:[%s22_s0] ss:$0 sm:$0xff] }
   0x2   :  { %5 = vst [vmem:[%s23_s1] sm:$0xff] %v4_v0 }

// kernel: tile.95
= control target key start
LH: loop header
LB: loop body
LE: loop exit
PB: predicated region body
PF: predicated region fallthrough
CT: control target
= control target key end

     0   :  { %s51_s10 = smov 40   ;;  %s52_s11 = smov 24   ;;  %vm3_vm0 = vcmask 64512   ;;  %vm9_vm1 = vcmask 392512   ;;  %vm15_vm2 = vcmask 326912   ;;  %vm21_vm3 = vcmask 261312   ;;  %s87_s0 = inlined_call_operand.vmem [shape: f32[6,8], index: 0, kind: input, shape index: {}]   ;;  %s88_s1 = inlined_call_operand.vmem [shape: f32[1,1,48], index: 1, kind: output, shape index: {}]  }
   0x1   :  { %v41_v0 = vld [vmem:[%s87_s0 + $0x5] sm:$0x1]   ;;  %v43_v1 = vld [vmem:[%s87_s0 + $0x3] sm:$0x1]   ;;  %v45_v2 = vld [vmem:[%s87_s0 + $0x1] sm:$0x1]  }
   0x2   :  { %7 = vrot.lane.b32.xlu0 %v41_v0, %s51_s10  ;;  %19 = vrot.lane.b32.xlu1 %v43_v1, %s52_s11  ;;  %s53_s14 = smov 8   ;;  %v42_v3 = vld [vmem:[%s87_s0 + $0x4] sm:$0x1]   ;;  %v44_v4 = vld [vmem:[%s87_s0 + $0x2] sm:$0x1]   ;;  %s54_s19 = smov 32  }
   0x3   :  { %31 = vrot.lane.b32.xlu2 %v45_v2, %s53_s14  ;;  %s55_s20 = smov 16   ;;  %v2_v5 = vld [vmem:[%s87_s0] sm:$0x1]   ;;  %vm27_vm4 = vcmask 195712   ;;  %vm33_vm5 = vcmask 130112  }
   0x4   :  { %4 = vst.msk [vmem:[#allocation0] sm:$0x1] %vm3_vm0, %v2_v5  }
   0xa   :  { %13 = vrot.lane.b32.xlu0 %v42_v3, %s54_s19  ;;  %25 = vrot.lane.b32.xlu1 %v44_v4, %s55_s20 }
  0x5d   :  { %v32_v6 = vpop.permute.xlu2 %31  }
  0x74   :  { %v8_v7 = vpop.permute.xlu0 %7   ;;  %v20_v8 = vpop.permute.xlu1 %19  }
  0x75   :  { %10 = vst.msk [vmem:[#allocation0] sm:$0x1] %vm9_vm1, %v8_v7  }
  0x7c   :  { %v14_v9 = vpop.permute.xlu0 %13   ;;  %v26_v10 = vpop.permute.xlu1 %25  }
  0x7d   :  { %16 = vst.msk [vmem:[#allocation0] sm:$0x1] %vm15_vm2, %v14_v9  }
  0x7e   :  { %22 = vst.msk [vmem:[#allocation0] sm:$0x1] %vm21_vm3, %v20_v8  }
  0x7f   :  { %28 = vst.msk [vmem:[#allocation0] sm:$0x1] %vm27_vm4, %v26_v10  }
  0x80   :  { %34 = vst.msk [vmem:[#allocation0] sm:$0x1] %vm33_vm5, %v32_v6  }
  0x87   :  { %v37_v11 = vld [vmem:[#allocation0] sm:$0x1] }
  0x88   :  { %40 = vst [vmem:[%s88_s1] sm:$0x1] %v37_v11 }

// kernel: impala_block_pallas.1
= control target key start
LH: loop header
LB: loop body
LE: loop exit
PB: predicated region body
PF: predicated region fallthrough
CT: control target
= control target key end

     0   :  { %s1720_s27 = smov 0   ;;  %s2135_s0 = inlined_call_operand.vmem [shape: bf16[2,8,64], index: 0, kind: input, shape index: {}]   ;;  %s2136_s1 = inlined_call_operand.vmem [shape: bf16[2,7,64], index: 1, kind: input, shape index: {}]   ;;  %s2137_s2 = inlined_call_operand.vmem [shape: bf16[192,144], index: 2, kind: input, shape index: {}]   ;;  %s2138_s3 = inlined_call_operand.vmem [shape: f32[1,144], index: 3, kind: input, shape index: {}]   ;;  %s2139_s4 = inlined_call_operand.vmem [shape: f32[1,144], index: 4, kind: input, shape index: {}]   ;;  %s2140_s5 = inlined_call_operand.vmem [shape: bf16[4,144,48], index: 5, kind: input, shape index: {}]   ;;  %s2141_s6 = inlined_call_operand.vmem [shape: f32[4,1,48], index: 6, kind: input, shape index: {}]   ;;  %s2142_s7 = inlined_call_operand.vmem [shape: f32[4,1,48], index: 7, kind: input, shape index: {}]   ;;  %s2143_s8 = inlined_call_operand.vmem [shape: f32[2,6,48], index: 8, kind: output, shape index: {}]  }
   0x1 LB: > { %s1263_s28 = sadd.s32 4294967295, %s1668_s27   ;;  %p1267_p0 = scmp.ge.s32.totalorder %s1668_s27, 1  ;;  %s1668_s27 = sphi %s1720_s27, %s18_s27  }
   0x2   : > { %p270_p1 = scmp.lt.s32.totalorder %s1668_s27, 3 }
   0x4   : > { %p271_p2 = pnand %p1267_p0, %p270_p1 }
   0x5   : > { %p306_p3 = scmp.lt.s32.totalorder (!%p271_p2), %s1263_s28, 1  ;;  %s1671_s16 = smov (!%p271_p2), 32  }
   0x6   : > { %274 = sbr.rel (%p271_p2) target bundleno = 1469 (0x5bd), region = 52  ;;  %s1672_s17 = smov (!%p271_p2), 80  }
   0x7   : > { %s1674_s20 = smov (!%p271_p2), 48  }
   0xb   : > { %v1329_v0 = vld [vmem:[%s2137_s2 + $0x70] sm:$0xf]  ;;  %v1596_v1 = vld [vmem:[%s2137_s2 + $0x74] sm:$0xf0]  ;;  %v1321_v3 = vld [vmem:[%s2137_s2 + $0x60] sm:$0xf] }
   0xc   : > { %v1734_v2 = vor.u32 %v1596_v1, %v1329_v0  ;;  %v1594_v4 = vld [vmem:[%s2137_s2 + $0x64] sm:$0xf0]  ;;  %s2145_s28 = smov (!%p306_p3, %s1263_s28), 1  ;;  %v1361_v5 = vld [vmem:[%s2137_s2 + $0xb0] sm:$0xf]  ;;  %vm336_vm0 = vcmask 523264  }
   0xd   : > { %v1748_v6 = vor.u32 %v1594_v4, %v1321_v3  ;;  %v1313_v7 = vld [vmem:[%s2137_s2 + $0x50] sm:$0xf]  ;;  %v1592_v8 = vld [vmem:[%s2137_s2 + $0x54] sm:$0xf0]  ;;  %s1268_s23 = sshll.u32 %s2145_s28, 2  ;;  %vm638_vm1 = vcmask 261120  }
   0xe   : > { %501 = vmatpush.bf16.msra.mxu0 %v1734_v2  ;;  %v1604_v9 = vld [vmem:[%s2137_s2 + $0xb4] sm:$0xf0]  ;;  %v1353_v11 = vld [vmem:[%s2137_s2 + $0xa0] sm:$0xf]  ;;  %v1602_v12 = vld [vmem:[%s2137_s2 + $0xa4] sm:$0xf0]  ;;  %s313_s10 = scalar_lea.vmem %s2136_s1, %s1268_s23  ;;  %s309_s19 = scalar_lea.vmem %s2135_s0, %s1268_s23  ;;  %v1800_v23 = vor.u32 %v1592_v8, %v1313_v7 }
   0xf   : > { %v1760_v10 = vor.u32 %v1604_v9, %v1361_v5  ;;  %v1595_v13 = vld [vmem:[%s2137_s2 + $0x74] sm:$0xf]  ;;  %v1331_v14 = vld [vmem:[%s2137_s2 + $0x78] sm:$0xf0]  ;;  %v1780_v16 = vld [vmem:[%s313_s10] sm:$0xf]  ;;  %v1789_v18 = vor.u32 %v1602_v12, %v1353_v11 }
  0x10   : > { %v1603_v15 = vld [vmem:[%s2137_s2 + $0xb4] sm:$0xf]  ;;  %v1305_v17 = vld [vmem:[%s2137_s2 + $0x40] sm:$0xf]  ;;  %v1791_v19 = vor.u32 %v1595_v13, %v1331_v14  ;;  %v1363_v20 = vld [vmem:[%s2137_s2 + $0xb8] sm:$0xf0]  ;;  %v322_v21 = vunpack.c.l.b16 %v1780_v16 }
  0x11   : > { %518 = vmatpush.bf16.msra.mxu1 %v1760_v10  ;;  %v1797_v22 = vld [vmem:[%s309_s19] sm:$0xf]  ;;  %v1590_v24 = vld [vmem:[%s2137_s2 + $0x44] sm:$0xf0]  ;;  %v1805_v25 = vor.u32 %v1603_v15, %v1363_v20  ;;  %v1345_v26 = vld [vmem:[%s2137_s2 + $0x90] sm:$0xf] }
  0x12   : > { %502 = vmatpush.bf16.msra.mxu0 %v1748_v6  ;;  %v327_v27 = vunpack.c.l.b16 %v1797_v22  ;;  %527 = vmatpush.bf16.msra.mxu2 %v1791_v19  ;;  %v1600_v28 = vld [vmem:[%s2137_s2 + $0x94] sm:$0xf0]  ;;  %v1593_v29 = vld [vmem:[%s2137_s2 + $0x64] sm:$0xf]  ;;  %v1323_v30 = vld [vmem:[%s2137_s2 + $0x68] sm:$0xf0]  ;;  %v1821_v31 = vpack.c.b16 %v322_v21, %v322_v21  ;;  %v1849_v41 = vor.u32 %v1590_v24, %v1305_v17 }
  0x13   : > { %544 = vmatpush.bf16.msra.mxu3 %v1805_v25  ;;  %v1824_v32 = vor.u32 %v1593_v29, %v1323_v30  ;;  %v1601_v33 = vld [vmem:[%s2137_s2 + $0xa4] sm:$0xf]  ;;  %v1355_v34 = vld [vmem:[%s2137_s2 + $0xa8] sm:$0xf0]  ;;  %v1297_v36 = vld [vmem:[%s2137_s2 + $0x30] sm:$0xf]  ;;  %v1839_v38 = vor.u32 %v1600_v28, %v1345_v26 }
  0x14   : > { %v328_v35 = vpack.c.b16 %v327_v27, %v327_v27  ;;  %v1588_v37 = vld [vmem:[%s2137_s2 + $0x34] sm:$0xf0]  ;;  %v1841_v39 = vor.u32 %v1601_v33, %v1355_v34  ;;  %v1337_v40 = vld [vmem:[%s2137_s2 + $0x80] sm:$0xf]  ;;  %s1670_s23 = smov 64   ;;  %v344_v20 = vshrl.u32 %v1821_v31, 16 }
  0x15   : > { %519 = vmatpush.bf16.msra.mxu1 %v1789_v18  ;;  %324 = vrot.lane.b32.xlu0 %v1821_v31, %s1670_s23  ;;  %v1598_v42 = vld [vmem:[%s2137_s2 + $0x84] sm:$0xf0]  ;;  %v1591_v43 = vld [vmem:[%s2137_s2 + $0x54] sm:$0xf]  ;;  %v1315_v44 = vld [vmem:[%s2137_s2 + $0x58] sm:$0xf0]  ;;  %v1298_v55 = vor.u32 %v1588_v37, %v1297_v36 }
  0x16   : > { %503 = vmatpush.bf16.msra.mxu0 %v1800_v23  ;;  %v330_v45 = vshrl.u32 %v328_v35, 16  ;;  %v332_v46 = vshll.u32 %v328_v35, 16  ;;  %528 = vmatpush.bf16.msra.mxu2 %v1824_v32  ;;  %v1861_v47 = vor.u32 %v1591_v43, %v1315_v44  ;;  %v1599_v48 = vld [vmem:[%s2137_s2 + $0x94] sm:$0xf]  ;;  %v1347_v49 = vld [vmem:[%s2137_s2 + $0x98] sm:$0xf0]  ;;  %v1338_v52 = vor.u32 %v1598_v42, %v1337_v40 }
  0x17   : > { %545 = vmatpush.bf16.msra.mxu3 %v1841_v39  ;;  %v1870_v50 = vor.u32 %v1599_v48, %v1347_v49  ;;  %v1589_v53 = vld [vmem:[%s2137_s2 + $0x44] sm:$0xf]  ;;  %v1307_v54 = vld [vmem:[%s2137_s2 + $0x48] sm:$0xf0]  ;;  %v1289_v59 = vld [vmem:[%s2137_s2 + $0x20] sm:$0xf] }
  0x18   : > { %v334_v51 = vrot.slane %v332_v46, 1  ;;  %v1597_v56 = vld [vmem:[%s2137_s2 + $0x84] sm:$0xf]  ;;  %v1339_v57 = vld [vmem:[%s2137_s2 + $0x88] sm:$0xf0]  ;;  %v1310_v61 = vor.u32 %v1589_v53, %v1307_v54  ;;  %vm664_vm2 = vcmask 1040384  }
  0x19   : > { %520 = vmatpush.bf16.msra.mxu1 %v1839_v38  ;;  %v1586_v60 = vld [vmem:[%s2137_s2 + $0x24] sm:$0xf0]  ;;  %v1342_v62 = vor.u32 %v1597_v56, %v1339_v57  ;;  %v1281_v63 = vld [vmem:[%s2137_s2 + $0x10] sm:$0xf]  ;;  %v1584_v0 = vld [vmem:[%s2137_s2 + $0x14] sm:$0xf0] }
  0x1a   : > { %504 = vmatpush.bf16.msra.mxu0 %v1849_v41  ;;  %v335_v58 = vor.u32 %v334_v51, %v330_v45  ;;  %529 = vmatpush.bf16.msra.mxu2 %v1861_v47  ;;  %v1587_v1 = vld [vmem:[%s2137_s2 + $0x34] sm:$0xf]  ;;  %v1299_v3 = vld [vmem:[%s2137_s2 + $0x38] sm:$0xf0]  ;;  %v1290_v4 = vor.u32 %v1586_v60, %v1289_v59  ;;  %v1585_v7 = vld [vmem:[%s2137_s2 + $0x24] sm:$0xf]  ;;  %v1282_v9 = vor.u32 %v1584_v0, %v1281_v63 }
  0x1b   : > { %546 = vmatpush.bf16.msra.mxu3 %v1870_v50  ;;  %v1302_v5 = vor.u32 %v1587_v1, %v1299_v3  ;;  %v1291_v8 = vld [vmem:[%s2137_s2 + $0x28] sm:$0xf0]  ;;  %v1583_v12 = vld [vmem:[%s2137_s2 + $0x14] sm:$0xf]  ;;  %v1581_v15 = vld [vmem:[%s2137_s2 + $0x4] sm:$0xf] }
  0x1c   : > { %v1294_v11 = vor.u32 %v1585_v7, %v1291_v8  ;;  %v1275_v17 = vld [vmem:[%s2137_s2 + $0x8] sm:$0xf0]  ;;  %v616_v34 = vld [vmem:[%s2139_s4] sm:$0x3]  ;;  %vm666_vm3 = vcmask 1046528   ;;  %vm677_vm4 = vcmask 392192  }
  0x1d   : > { %521 = vmatpush.bf16.msra.mxu1 %v1338_v52  ;;  %341 = vrot.lane.b32.xlu0 %v335_v58, %s1670_s23  ;;  %v618_v37 = vperm.slane %v616_v34, 0  ;;  %s1673_s23 = smov 96   ;;  %vm679_vm5 = vcmask 785408   ;;  %vm755_vm6 = vcmask 130048   ;;  %s1270_s14 = sshll.u32 %s2145_s28, 3  ;;  %vm1196_vm7 = vcmask 390144  }
  0x1e   : > { %505 = vmatpush.bf16.msra.mxu0 %v1298_v55  ;;  %530 = vmatpush.bf16.msra.mxu2 %v1310_v61 }
  0x1f   : > { %547 = vmatpush.bf16.msra.mxu3 %v1342_v62 }
  0x20   : > { %1367 = vmatmul.msk.bf16.vlgmr.msra.gmra.mxu1 %vm336_vm0, %v335_v58 }
  0x21   : > { %556 = vmatpush.bf16.msrb.mxu1 %v1734_v2  ;;  %v1273_v2 = vld [vmem:[%s2137_s2] sm:$0xf] }
  0x22   : > { %506 = vmatpush.bf16.msra.mxu0 %v1290_v4  ;;  %1368 = vmatmul.msk.bf16.vlgmr.msra.gmra.mxu3 %vm336_vm0, %v335_v58 }
  0x23   : > { %573 = vmatpush.bf16.msrb.mxu3 %v1760_v10  ;;  %v1582_v10 = vld [vmem:[%s2137_s2 + $0x4] sm:$0xf0]  ;;  %531 = vmatpush.bf16.msra.mxu2 %v1302_v5 }
  0x24   : > { %v1274_v13 = vor.u32 %v1582_v10, %v1273_v2 }
  0x25   : > { %557 = vmatpush.bf16.msrb.mxu1 %v1748_v6  ;;  %v1283_v6 = vld [vmem:[%s2137_s2 + $0x18] sm:$0xf0] }
  0x26   : > { %507 = vmatpush.bf16.msra.mxu0 %v1282_v9  ;;  %v1286_v14 = vor.u32 %v1583_v12, %v1283_v6 }
  0x27   : > { %574 = vmatpush.bf16.msrb.mxu3 %v1789_v18  ;;  %532 = vmatpush.bf16.msra.mxu2 %v1294_v11  ;;  %v1278_v18 = vor.u32 %v1581_v15, %v1275_v17 }
  0x29   : > { %558 = vmatpush.bf16.msrb.mxu1 %v1800_v23 }
  0x2a   : > { %508 = vmatpush.bf16.msra.mxu0 %v1274_v13 }
  0x2b   : > { %575 = vmatpush.bf16.msrb.mxu3 %v1839_v38  ;;  %533 = vmatpush.bf16.msra.mxu2 %v1286_v14 }
  0x2d   : > { %559 = vmatpush.bf16.msrb.mxu1 %v1849_v41 }
  0x2e   : > { %582 = vmatpush.bf16.msrb.mxu0 %v1791_v19  ;;  %v346_v19 = vshll.u32 %v1821_v31, 16 }
  0x2f   : > { %576 = vmatpush.bf16.msrb.mxu3 %v1338_v52  ;;  %534 = vmatpush.bf16.msra.mxu2 %v1278_v18 }
  0x30   : > { %v348_v21 = vrot.slane %v346_v19, 1  ;;  %v1611_v19 = vld [vmem:[%s2140_s5 + $0x30] sm:$0xff] }
  0x31   : > { %560 = vmatpush.bf16.msrb.mxu1 %v1298_v55 }
  0x32   : > { %583 = vmatpush.bf16.msrb.mxu0 %v1824_v32  ;;  %v349_v23 = vor.u32 %v348_v21, %v344_v20  ;;  %v1610_v20 = vld [vmem:[%s2140_s5 + $0x28] sm:$0xff]  ;;  %v1613_v21 = vld [vmem:[%s2140_s5 + $0x40] sm:$0xff] }
  0x33   : > { %599 = vmatpush.bf16.msrb.mxu2 %v1805_v25 }
  0x34   : > { %1369 = vmatmul.msk.bf16.vlgmr.msrb.gmra.mxu3 %vm336_vm0, %v349_v23 }
  0x35   : > { %561 = vmatpush.bf16.msrb.mxu1 %v1290_v4 }
  0x36   : > { %584 = vmatpush.bf16.msrb.mxu0 %v1861_v47  ;;  %v619_v47 = vperm.slane %v616_v34, 1  ;;  %v1622_v34 = vld [vmem:[%s2140_s5 + $0x88] sm:$0xff] }
  0x37   : > { %600 = vmatpush.bf16.msrb.mxu2 %v1841_v39 }
  0x39   : > { %562 = vmatpush.bf16.msrb.mxu1 %v1282_v9 }
  0x3a   : > { %585 = vmatpush.bf16.msrb.mxu0 %v1310_v61  ;;  %v1612_v61 = vld [vmem:[%s2140_s5 + $0x38] sm:$0xff] }
  0x3b   : > { %601 = vmatpush.bf16.msrb.mxu2 %v1870_v50  ;;  %759 = vmatpush.bf16.msra.mxu3 %v1612_v61 }
  0x3d   : > { %563 = vmatpush.bf16.msrb.mxu1 %v1274_v13 }
  0x3e   : > { %586 = vmatpush.bf16.msrb.mxu0 %v1302_v5 }
  0x3f   : > { %602 = vmatpush.bf16.msrb.mxu2 %v1342_v62  ;;  %760 = vmatpush.bf16.msra.mxu3 %v1611_v19 }
  0x41   : > { %779 = vmatpush.bf16.msra.mxu1 %v1613_v21 }
  0x42   : > { %587 = vmatpush.bf16.msrb.mxu0 %v1294_v11 }
  0x43   : > { %761 = vmatpush.bf16.msra.mxu3 %v1610_v20 }
  0x46   : > { %588 = vmatpush.bf16.msrb.mxu0 %v1286_v14 }
  0x4a   : > { %589 = vmatpush.bf16.msrb.mxu0 %v1278_v18 }
  0x87   : > { %v325_v24 = vpop.permute.xlu0 %324 }
  0x88   : > { %v339_v25 = vsel %vm336_vm0, %v1797_v22, %v325_v24  ;;  %v608_v22 = vld [vmem:[%s2138_s3] sm:$0x3]  ;;  %v1608_v24 = vld [vmem:[%s2140_s5 + $0x18] sm:$0xff] }
  0x89   : > { %509 = vmatmul.bf16.vlgmr.msra.gmra.mxu0 %v339_v25  ;;  %535 = vmatmul.bf16.vlgmr.msra.gmra.mxu2 %v339_v25  ;;  %v610_v35 = vperm.slane %v608_v22, 0  ;;  %v611_v39 = vperm.slane %v608_v22, 1  ;;  %v1607_v25 = vld [vmem:[%s2140_s5 + $0x10] sm:$0xff]  ;;  %v1621_v22 = vld [vmem:[%s2140_s5 + $0x80] sm:$0xff] }
  0x8a   : > { %890 = vmatpush.bf16.msra.mxu2 %v1621_v22  ;;  %v1658_v22 = vld [vmem:[%s2141_s6 + $0x2] ss:$0 sm:$0xff] }
  0x8f   : > { %v342_v26 = vpop.permute.xlu0 %341 }
  0x90   : > { %v352_v27 = vsel %vm336_vm0, %v1780_v16, %v342_v26  ;;  %v1606_v26 = vld [vmem:[%s2140_s5 + $0x8] sm:$0xff] }
  0x91   : > { %564 = vmatmul.bf16.vlgmr.msrb.gmra.mxu1 %v352_v27 }
  0x99   : > { %590 = vmatmul.bf16.vlgmr.msrb.gmra.mxu0 %v352_v27  ;;  %1370 = vmatmul.msk.bf16.vlgmr.msrb.gmra.mxu2 %vm336_vm0, %v349_v23  ;;  %v1609_v23 = vld [vmem:[%s2140_s5 + $0x20] sm:$0xff] }
  0x9a   : > { %762 = vmatpush.bf16.msra.mxu3 %v1609_v23  ;;  %v1605_v27 = vld [vmem:[%s2140_s5] sm:$0xff] }
  0x9d   : > { %v523_v28 = vpop.f32.mrf.mxu1 }
  0x9e   : > { %763 = vmatpush.bf16.msra.mxu3 %v1608_v24 }
  0xa2   : > { %764 = vmatpush.bf16.msra.mxu3 %v1607_v25 }
  0xa5   : > { %v525_v29 = vpop.f32.mrf.mxu1  ;;  %v549_v30 = vpop.f32.mrf.mxu3 }
  0xa6   : > { %765 = vmatpush.bf16.msra.mxu3 %v1606_v26 }
  0xaa   : > { %766 = vmatpush.bf16.msra.mxu3 %v1605_v27 }
  0xad   : > { %v551_v31 = vpop.f32.mrf.mxu3 }
  0xae   : > { %910 = vmatpush.bf16.msrb.mxu3 %v1622_v34 }
  0xb7   : > { %v578_v32 = vpop.f32.mrf.mxu3 }
  0xbf   : > { %v580_v33 = vpop.f32.mrf.mxu3 }
 0x106   : > { %v510_v16 = vpop.f32.mrf.mxu0 }
 0x107   : > { %v524_v36 = vadd.f32 %v523_v28, %v510_v16  ;;  %v1654_v16 = vld [vmem:[%s2141_s6] ss:$0 sm:$0xff] }
 0x109   : > { %v614_v38 = vmul.f32 %v610_v35, %v524_v36 }
 0x10b   : > { %v622_v40 = vadd.f32 %v618_v37, %v614_v38  ;;  %v1655_v38 = vld [vmem:[%s2142_s7] ss:$0 sm:$0xff] }
 0x10c   : > { %v536_v41 = vpop.f32.mrf.mxu2 }
 0x10d   : > { %v550_v42 = vadd.f32 %v549_v30, %v536_v41  ;;  %634 = vrot.lane.b32.xlu2 %v622_v40, %s1671_s16  ;;  %629 = vrot.lane.b32.xlu1 %v622_v40, %s1672_s17 }
 0x10e   : > { %v512_v43 = vpop.f32.mrf.mxu0  ;;  %v565_v44 = vpop.f32.mrf.mxu1 }
 0x10f   : > { %v615_v45 = vmul.f32 %v611_v39, %v550_v42  ;;  %v579_v46 = vadd.f32 %v578_v32, %v565_v44 }
 0x111   : > { %v624_v48 = vmul.f32 %v610_v35, %v579_v46  ;;  %v623_v49 = vadd.f32 %v619_v47, %v615_v45 }
 0x113   : > { %v626_v50 = vadd.f32 %v624_v48, %v618_v37 }
 0x114   : > { %v538_v51 = vpop.f32.mrf.mxu2 }
 0x115   : > { %636 = vrot.lane.b32.xlu2 %v623_v49, %s1671_s16  ;;  %643 = vrot.lane.b32.xlu1 %v626_v50, %s1672_s17  ;;  %v1620_v49 = vld [vmem:[%s2140_s5 + $0x78] sm:$0xff]  ;;  %v1618_v51 = vld [vmem:[%s2140_s5 + $0x68] sm:$0xff]  ;;  %s317_s17 = scalar_lea.vmem %s2143_s8, %s1270_s14 }
 0x116   : > { %v567_v52 = vpop.f32.mrf.mxu1  ;;  %v591_v53 = vpop.f32.mrf.mxu0  ;;  %648 = vrot.lane.b32.xlu0 %v626_v50, %s1671_s16  ;;  %891 = vmatpush.bf16.msra.mxu2 %v1620_v49  ;;  %v1635_v49 = vld [vmem:[%s2140_s5 + $0xf0] sm:$0xff] }
 0x117   : > { %v1617_v52 = vld [vmem:[%s2140_s5 + $0x60] sm:$0xff] }
 0x11c   : > { %v604_v54 = vpop.f32.mrf.mxu2 }
 0x11d   : > { %v605_v55 = vadd.f32 %v604_v54, %v591_v53  ;;  %v1616_v53 = vld [vmem:[%s2140_s5 + $0x58] sm:$0xff]  ;;  %v1615_v54 = vld [vmem:[%s2140_s5 + $0x50] sm:$0xff] }
 0x11e   : > { %v593_v56 = vpop.f32.mrf.mxu0 }
 0x11f   : > { %v625_v57 = vmul.f32 %v611_v39, %v605_v55  ;;  %v1614_v55 = vld [vmem:[%s2140_s5 + $0x48] sm:$0xff] }
 0x121   : > { %v627_v58 = vadd.f32 %v625_v57, %v619_v47 }
 0x123   : > { %650 = vrot.lane.b32.xlu1 %v627_v58, %s1671_s16 }
 0x124   : > { %v606_v59 = vpop.f32.mrf.mxu2 }
 0x167   : > { %v635_v62 = vpop.permute.xlu2 %634 }
 0x16f   : > { %v637_v0 = vpop.permute.xlu2 %636 }
 0x170   : > { %v639_v3 = vsel %vm638_vm1, %v635_v62, %v637_v0  ;;  %v1630_v0 = vld [vmem:[%s2140_s5 + $0xc8] sm:$0xff] }
 0x171   : > { %1024 = vmatpush.bf16.msrb.mxu1 %v1630_v0  ;;  %v1661_v0 = vld [vmem:[%s2142_s7 + $0x3] ss:$0 sm:$0xff] }
 0x17f   : > { %v630_v60 = vpop.permute.xlu1 %629 }
 0x180   : > { %v632_v1 = vmax.f32 %v622_v40, %v630_v60 }
 0x182   : > { %v641_v4 = vmax.f32 %v632_v1, %v639_v3  ;;  %v1631_v1 = vld [vmem:[%s2140_s5 + $0xd0] sm:$0xff]  ;;  %v1629_v3 = vld [vmem:[%s2140_s5 + $0xc0] sm:$0xff] }
 0x183   : > { %1025 = vmatpush.bf16.msrb.mxu1 %v1629_v3 }
 0x184   : > { %v657_v10 = vrot.slane %v641_v4, 1 }
 0x187   : > { %v644_v63 = vpop.permute.xlu1 %643 }
 0x188   : > { %v646_v5 = vmax.f32 %v626_v50, %v644_v63  ;;  %v649_v7 = vpop.permute.xlu0 %648  ;;  %v1619_v50 = vld [vmem:[%s2140_s5 + $0x70] sm:$0xff] }
 0x189   : > { %892 = vmatpush.bf16.msra.mxu2 %v1619_v50  ;;  %v1634_v50 = vld [vmem:[%s2140_s5 + $0xe8] sm:$0xff] }
 0x18d   : > { %893 = vmatpush.bf16.msra.mxu2 %v1618_v51  ;;  %v1633_v51 = vld [vmem:[%s2140_s5 + $0xe0] sm:$0xff] }
 0x191   : > { %894 = vmatpush.bf16.msra.mxu2 %v1617_v52  ;;  %v1632_v52 = vld [vmem:[%s2140_s5 + $0xd8] sm:$0xff] }
 0x195   : > { %v651_v8 = vpop.permute.xlu1 %650  ;;  %895 = vmatpush.bf16.msra.mxu2 %v1616_v53 }
 0x196   : > { %v652_v9 = vsel %vm638_vm1, %v649_v7, %v651_v8  ;;  %v1656_v7 = vld [vmem:[%s2141_s6 + $0x1] ss:$0 sm:$0xff]  ;;  %v1626_v8 = vld [vmem:[%s2140_s5 + $0xa8] sm:$0xff] }
 0x197   : > { %v654_v2 = vmax.f32 %v646_v5, %v652_v9  ;;  %v1627_v5 = vld [vmem:[%s2140_s5 + $0xb0] sm:$0xff] }
 0x199   : > { %v655_v11 = vmax.f32 %v641_v4, %v654_v2  ;;  %896 = vmatpush.bf16.msra.mxu2 %v1615_v54  ;;  %v1628_v4 = vld [vmem:[%s2140_s5 + $0xb8] sm:$0xff] }
 0x19a   : > { %1026 = vmatpush.bf16.msrb.mxu1 %v1628_v4 }
 0x19b   : > { %v1963_v12 = vmax.f32 %v655_v11, %v657_v10  ;;  %v1657_v10 = vld [vmem:[%s2142_s7 + $0x1] ss:$0 sm:$0xff] }
 0x19d   : > { %v660_v6 = vmax.f32 %v1963_v12, 0.0  ;;  %897 = vmatpush.bf16.msra.mxu2 %v1614_v55 }
 0x19e   : > { %1027 = vmatpush.bf16.msrb.mxu1 %v1627_v5 }
 0x19f   : > { %v662_v13 = vrot.slane %v660_v6, 7  ;;  %v1625_v6 = vld [vmem:[%s2140_s5 + $0xa0] sm:$0xff] }
 0x1a1   : > { %v665_v14 = vsel %vm664_vm2, 0.0, %v662_v13 }
 0x1a2   : > { %v667_v15 = vsel %vm666_vm3, %v665_v14, 0.0  ;;  %1028 = vmatpush.bf16.msrb.mxu1 %v1626_v8 }
 0x1a3   : > { %v673_v17 = vrot.slane %v667_v15, 2  ;;  %v669_v18 = vrot.slane %v667_v15, 1 }
 0x1a5   : > { %674 = vrot.lane.b32.xlu0 %v673_v17, %s1673_s23  ;;  %670 = vrot.lane.b32.xlu2 %v669_v18, %s1674_s20 }
 0x1a6   : > { %1029 = vmatpush.bf16.msrb.mxu1 %v1625_v6 }
 0x1ff   : > { %v671_v28 = vpop.permute.xlu2 %670 }
 0x200   : > { %v678_v29 = vsel %vm677_vm4, %v667_v15, %v671_v28  ;;  %v1624_v15 = vld [vmem:[%s2140_s5 + $0x98] sm:$0xff] }
 0x201   : > { %1030 = vmatpush.bf16.msrb.mxu1 %v1624_v15 }
 0x217   : > { %v675_v30 = vpop.permute.xlu0 %674 }
 0x218   : > { %v680_v31 = vsel %vm679_vm5, %v678_v29, %v675_v30  ;;  %v682_v32 = vpack.c.bf16 %v675_v30, %v675_v30 }
 0x219   : > { %v681_v33 = vpack.c.bf16 %v680_v31, %v680_v31  ;;  %v1639_v31 = vld [vmem:[%s2140_s5 + $0x110] sm:$0xff] }
 0x21a   : > { %1407 = vmatmul.msk.bf16.vlgmr.msra.gmra.mxu1 %vm755_vm6, %v682_v32  ;;  %v1640_v32 = vld [vmem:[%s2140_s5 + $0x118] sm:$0xff]  ;;  %1157 = vmatpush.bf16.msra.mxu0 %v1639_v31 }
 0x21b   : > { %767 = vmatmul.bf16.vlgmr.msra.gmra.mxu3 %v681_v33  ;;  %1177 = vmatpush.bf16.msrb.mxu2 %v1640_v32 }
 0x21c   : > { %1044 = vmatpush.bf16.msra.mxu3 %v1631_v1 }
 0x297   : > { %v781_v35 = vpop.f32.mrf.mxu1 }
 0x29e   : > { %v768_v36 = vpop.f32.mrf.mxu3 }
 0x29f   : > { %v782_v37 = vadd.f32 %v781_v35, %v768_v36  ;;  %v783_v39 = vpop.f32.mrf.mxu1 }
 0x2a1   : > { %v789_v40 = vmul.f32 %v1654_v16, %v782_v37  ;;  %v1659_v16 = vld [vmem:[%s2142_s7 + $0x2] ss:$0 sm:$0xff] }
 0x2a3   : > { %v794_v41 = vadd.f32 %v1655_v38, %v789_v40 }
 0x2a5   : > { %v795_v42 = vmax.f32 %v794_v41, 0.0 }
 0x2a6   : > { %v770_v43 = vpop.f32.mrf.mxu3 }
 0x2a7   : > { %v797_v44 = vrot.slane %v795_v42, 7 }
 0x2a9   : > { %v799_v45 = vsel %vm664_vm2, 0.0, %v797_v44 }
 0x2aa   : > { %v800_v46 = vsel %vm666_vm3, %v799_v45, 0.0 }
 0x2ab   : > { %v806_v47 = vrot.slane %v800_v46, 2  ;;  %v802_v48 = vrot.slane %v800_v46, 1 }
 0x2ad   : > { %807 = vrot.lane.b32.xlu2 %v806_v47, %s1673_s23  ;;  %803 = vrot.lane.b32.xlu1 %v802_v48, %s1674_s20  ;;  %v1637_v47 = vld [vmem:[%s2140_s5 + $0x100] sm:$0xff]  ;;  %v1636_v48 = vld [vmem:[%s2140_s5 + $0xf8] sm:$0xff] }
 0x307   : > { %v808_v56 = vpop.permute.xlu2 %807 }
 0x308   : > { %v813_v57 = vpack.c.bf16 %v808_v56, %v808_v56 }
 0x30a   : > { %1462 = vmatmul.msk.bf16.vlgmr.msrb.gmra.mxu3 %vm755_vm6, %v813_v57 }
 0x31f   : > { %v804_v58 = vpop.permute.xlu1 %803 }
 0x320   : > { %v810_v59 = vsel %vm677_vm4, %v800_v46, %v804_v58  ;;  %v1638_v46 = vld [vmem:[%s2140_s5 + $0x108] sm:$0xff] }
 0x321   : > { %v811_v60 = vsel %vm679_vm5, %v810_v59, %v808_v56  ;;  %1158 = vmatpush.bf16.msra.mxu0 %v1638_v46 }
 0x322   : > { %v812_v61 = vpack.c.bf16 %v811_v60, %v811_v60 }
 0x324   : > { %898 = vmatmul.bf16.vlgmr.msra.gmra.mxu2 %v812_v61  ;;  %v1660_v61 = vld [vmem:[%s2141_s6 + $0x3] ss:$0 sm:$0xff] }
 0x325   : > { %1159 = vmatpush.bf16.msra.mxu0 %v1637_v47 }
 0x329   : > { %1160 = vmatpush.bf16.msra.mxu0 %v1636_v48 }
 0x32d   : > { %1161 = vmatpush.bf16.msra.mxu0 %v1635_v49 }
 0x331   : > { %1162 = vmatpush.bf16.msra.mxu0 %v1634_v50 }
 0x335   : > { %1163 = vmatpush.bf16.msra.mxu0 %v1633_v51 }
 0x339   : > { %1164 = vmatpush.bf16.msra.mxu0 %v1632_v52 }
 0x38d   : > { %v912_v62 = vpop.f32.mrf.mxu3 }
 0x395   : > { %v914_v63 = vpop.f32.mrf.mxu3 }
 0x3a7   : > { %v899_v9 = vpop.f32.mrf.mxu2 }
 0x3a8   : > { %v913_v2 = vadd.f32 %v912_v62, %v899_v9 }
 0x3aa   : > { %v921_v11 = vmul.f32 %v1656_v7, %v913_v2 }
 0x3ac   : > { %v927_v13 = vadd.f32 %v1657_v10, %v921_v11 }
 0x3ae   : > { %v2065_v14 = vadd.f32 %v927_v13, %v1963_v12  ;;  %v1623_v12 = vld [vmem:[%s2140_s5 + $0x90] sm:$0xff] }
 0x3af   : > { %v901_v17 = vpop.f32.mrf.mxu2  ;;  %1031 = vmatpush.bf16.msrb.mxu1 %v1623_v12 }
 0x3b0   : > { %v929_v18 = vmax.f32 %v2065_v14, 0.0 }
 0x3b2   : > { %v931_v19 = vrot.slane %v929_v18, 7 }
 0x3b4   : > { %v933_v20 = vsel %vm664_vm2, 0.0, %v931_v19 }
 0x3b5   : > { %v934_v21 = vsel %vm666_vm3, %v933_v20, 0.0 }
 0x3b6   : > { %v940_v23 = vrot.slane %v934_v21, 2  ;;  %v936_v24 = vrot.slane %v934_v21, 1 }
 0x3b8   : > { %941 = vrot.lane.b32.xlu0 %v940_v23, %s1673_s23  ;;  %937 = vrot.lane.b32.xlu1 %v936_v24, %s1674_s20 }
 0x42a   : > { %v942_v25 = vpop.permute.xlu0 %941  ;;  %v938_v26 = vpop.permute.xlu1 %937 }
 0x42b   : > { %v947_v27 = vpack.c.bf16 %v942_v25, %v942_v25  ;;  %v944_v28 = vsel %vm677_vm4, %v934_v21, %v938_v26 }
 0x42c   : > { %v945_v29 = vsel %vm679_vm5, %v944_v28, %v942_v25 }
 0x42d   : > { %v946_v30 = vpack.c.bf16 %v945_v29, %v945_v29  ;;  %1519 = vmatmul.msk.bf16.vlgmr.msra.gmra.mxu3 %vm755_vm6, %v947_v27 }
 0x42f   : > { %1032 = vmatmul.bf16.vlgmr.msrb.gmra.mxu1 %v946_v30 }
 0x4ac   : > { %v1033_v33 = vpop.f32.mrf.mxu1 }
 0x4b0   : > { %v1046_v34 = vpop.f32.mrf.mxu3 }
 0x4b1   : > { %v1047_v35 = vadd.f32 %v1046_v34, %v1033_v33 }
 0x4b3   : > { %v1055_v36 = vmul.f32 %v1658_v22, %v1047_v35 }
 0x4b4   : > { %v1035_v37 = vpop.f32.mrf.mxu1 }
 0x4b5   : > { %v1061_v38 = vadd.f32 %v1659_v16, %v1055_v36 }
 0x4b7   : > { %v1062_v39 = vmax.f32 %v1061_v38, 0.0 }
 0x4b8   : > { %v1048_v40 = vpop.f32.mrf.mxu3 }
 0x4b9   : > { %v1064_v41 = vrot.slane %v1062_v39, 7 }
 0x4bb   : > { %v1066_v42 = vsel %vm664_vm2, 0.0, %v1064_v41 }
 0x4bc   : > { %v1067_v43 = vsel %vm666_vm3, %v1066_v42, 0.0 }
 0x4bd   : > { %v1073_v44 = vrot.slane %v1067_v43, 2  ;;  %v1069_v45 = vrot.slane %v1067_v43, 1 }
 0x4bf   : > { %1074 = vrot.lane.b32.xlu2 %v1073_v44, %s1673_s23  ;;  %1070 = vrot.lane.b32.xlu0 %v1069_v45, %s1674_s20 }
 0x519   : > { %v1075_v53 = vpop.permute.xlu2 %1074 }
 0x51a   : > { %v1080_v54 = vpack.c.bf16 %v1075_v53, %v1075_v53 }
 0x51c   : > { %1576 = vmatmul.msk.bf16.vlgmr.msrb.gmra.mxu2 %vm755_vm6, %v1080_v54 }
 0x531   : > { %v1071_v55 = vpop.permute.xlu0 %1070 }
 0x532   : > { %v1077_v56 = vsel %vm677_vm4, %v1067_v43, %v1071_v55 }
 0x533   : > { %v1078_v57 = vsel %vm679_vm5, %v1077_v56, %v1075_v53 }
 0x534   : > { %v1079_v58 = vpack.c.bf16 %v1078_v57, %v1078_v57 }
 0x536   : > { %1165 = vmatmul.bf16.vlgmr.msra.gmra.mxu0 %v1079_v58 }
 0x59f   : > { %v1179_v59 = vpop.f32.mrf.mxu2 }
 0x5a7   : > { %v1181_v60 = vpop.f32.mrf.mxu2 }
 0x5b3   : > { %v1166_v62 = vpop.f32.mrf.mxu0 }
 0x5b4   : > { %v1180_v63 = vadd.f32 %v1179_v59, %v1166_v62 }
 0x5b6   : > { %v1188_v1 = vmul.f32 %v1660_v61, %v1180_v63 }
 0x5b8   : > { %v1194_v3 = vadd.f32 %v1661_v0, %v1188_v1 }
 0x5ba   : > { %v1195_v4 = vadd.f32 %v1194_v3, %v2065_v14 }
 0x5bb   : > { %v1168_v5 = vpop.f32.mrf.mxu0 }
 0x5bc   : > { %1197 = vst.msk [vmem:[%s317_s17] sm:$0x3f] %vm1196_vm7, %v1195_v4 }
 0x5bd PF: > { %s18_s27 = sadd.s32 1, %s1668_s27  }
 0x5be   : > { %p15_p4 = scmp.ge.s32.totalorder %s18_s27, 4  }
 0x5c0   :  { %17 = sbr.rel (!%p15_p4) target bundleno = 1 (0x1), region = 94 }

</bundles_post_ra>
